<compile_context>
chip_gen: v5e
topology: v5e:2x2
jax: 0.10.0
libtpu: 0.0.40
codegen_flags: <defaults>
</compile_context>

<pallas_src>
import math
import jax
import jax.numpy as jnp
from jax.experimental import pallas as pl
from jax.experimental.pallas import tpu as pltpu


# ----------------------------------------------------------------------------
# Tiling helpers.
# ----------------------------------------------------------------------------
def _pick_tile(dim, target, mult):
    """Largest tile <= target that is a multiple of `mult` and divides `dim`;
    falls back to the full dim (always legal for TPU BlockSpecs)."""
    if dim <= target:
        return dim
    t = (target // mult) * mult
    while t >= mult:
        if dim % t == 0:
            return t
        t -= mult
    return dim


def _heads_per_block(nheads, head_dim):
    """Smallest head group whose lane width (hb*hd) is a multiple of 128;
    otherwise all heads (small-model fallback)."""
    for hb in range(1, nheads + 1):
        if nheads % hb == 0 and (hb * head_dim) % 128 == 0:
            return hb
    return nheads


# ----------------------------------------------------------------------------
# Kernel 1: tiled linear  y = x @ W + b  with optional fused epilogues
#   mode == "relu"   : y = relu(x @ W + b)
#   mode == "add_ln" : y = LayerNorm(res + x @ W + b) * gamma + beta  (tn == D)
# W is pre-transposed to (Din, Dout) -> canonical (tm,tk)@(tk,tn) MXU contraction.
# ----------------------------------------------------------------------------
def _make_linear_kernel(mode, eps=None):
    if mode == "add_ln":
        def kernel(x_ref, w_ref, b_ref, r_ref, g_ref, bt_ref, o_ref, acc_ref):
            @pl.when(pl.program_id(2) == 0)
            def _():
                acc_ref[...] = jnp.zeros_like(acc_ref)

            acc_ref[...] += jax.lax.dot_general(
                x_ref[...], w_ref[...],
                dimension_numbers=(((1,), (0,)), ((), ())),
                preferred_element_type=jnp.float32)

            @pl.when(pl.program_id(2) == pl.num_programs(2) - 1)
            def _():
                y = acc_ref[...] + b_ref[...].astype(jnp.float32)
                y = y + r_ref[...].astype(jnp.float32)           # residual add
                mean = jnp.mean(y, axis=-1, keepdims=True)
                yc = y - mean
                var = jnp.mean(yc * yc, axis=-1, keepdims=True)
                inv = jax.lax.rsqrt(var + eps)
                y = (yc * inv * g_ref[...].astype(jnp.float32)
                     + bt_ref[...].astype(jnp.float32))
                o_ref[...] = y.astype(o_ref.dtype)
        return kernel

    def kernel(x_ref, w_ref, b_ref, o_ref, acc_ref):
        @pl.when(pl.program_id(2) == 0)
        def _():
            acc_ref[...] = jnp.zeros_like(acc_ref)

        acc_ref[...] += jax.lax.dot_general(
            x_ref[...], w_ref[...],
            dimension_numbers=(((1,), (0,)), ((), ())),
            preferred_element_type=jnp.float32)

        @pl.when(pl.program_id(2) == pl.num_programs(2) - 1)
        def _():
            y = acc_ref[...] + b_ref[...].astype(jnp.float32)
            if mode == "relu":
                y = jnp.maximum(y, 0.0)
            o_ref[...] = y.astype(o_ref.dtype)
    return kernel


def pallas_linear(x, w, b, *, mode="none", residual=None, gamma=None, beta=None,
                  eps=1e-6):
    """x: (M, Din) bf16, w: (Din, Dout) bf16, b: (Dout,) f32 -> (M, Dout) bf16."""
    M, Din = x.shape
    Dout = w.shape[1]
    tm = _pick_tile(M, 256, 16)      # 16-row multiple for bf16 (16,128) tiles
    tk = _pick_tile(Din, 512, 128)
    b2 = b.reshape(1, Dout)

    if mode == "add_ln":
        tn = Dout                     # full-row output tile -> LN reduction in epilogue
        grid = (M // tm, 1, Din // tk)
        in_specs = [
            pl.BlockSpec((tm, tk), lambda i, j, k: (i, k)),
            pl.BlockSpec((tk, tn), lambda i, j, k: (k, j)),
            pl.BlockSpec((1, tn), lambda i, j, k: (0, j)),
            pl.BlockSpec((tm, Dout), lambda i, j, k: (i, 0)),
            pl.BlockSpec((1, Dout), lambda i, j, k: (0, 0)),
            pl.BlockSpec((1, Dout), lambda i, j, k: (0, 0)),
        ]
        args = (x, w, b2, residual, gamma.reshape(1, Dout), beta.reshape(1, Dout))
        kernel = _make_linear_kernel("add_ln", eps)
    else:
        tn = _pick_tile(Dout, 256, 128)
        grid = (M // tm, Dout // tn, Din // tk)
        in_specs = [
            pl.BlockSpec((tm, tk), lambda i, j, k: (i, k)),
            pl.BlockSpec((tk, tn), lambda i, j, k: (k, j)),
            pl.BlockSpec((1, tn), lambda i, j, k: (0, j)),
        ]
        args = (x, w, b2)
        kernel = _make_linear_kernel(mode)

    return pl.pallas_call(
        kernel,
        out_shape=jax.ShapeDtypeStruct((M, Dout), x.dtype),
        grid_spec=pltpu.PrefetchScalarGridSpec(
            num_scalar_prefetch=0,
            grid=grid,
            in_specs=in_specs,
            out_specs=pl.BlockSpec((tm, tn), lambda i, j, k: (i, j)),
            scratch_shapes=[pltpu.VMEM((tm, tn), jnp.float32)],
        ),
        compiler_params=pltpu.CompilerParams(
            dimension_semantics=("parallel", "parallel", "arbitrary")),
    )(*args)


# ----------------------------------------------------------------------------
# Kernel 2: multi-head attention, gridded over (batch, head-block).
# Heads are selected via BlockSpec index_maps straight out of the fused
# (B, L, 3D) projection; the output is ONE lane-dense (L, hb*hd) store.
# ----------------------------------------------------------------------------
def _make_attn_kernel(heads_per_block, head_dim, fused_fallback, d_model):
    def kernel(*refs):
        if fused_fallback:
            qkv_ref, o_ref = refs
            def get(section, hi):
                start = section * d_model + hi * head_dim
                return qkv_ref[0, :, start:start + head_dim]
            get_q = lambda hi: get(0, hi)
            get_k = lambda hi: get(1, hi)
            get_v = lambda hi: get(2, hi)
        else:
            q_ref, k_ref, v_ref, o_ref = refs
            get_q = lambda hi: q_ref[0, :, hi * head_dim:(hi + 1) * head_dim]
            get_k = lambda hi: k_ref[0, :, hi * head_dim:(hi + 1) * head_dim]
            get_v = lambda hi: v_ref[0, :, hi * head_dim:(hi + 1) * head_dim]

        # heads_per_block is small by construction (<= 128/head_dim for aligned
        # models), so the unrolled loop keeps at most a couple of (L, L) score
        # matrices live.  TODO(synk): flash-style Lq/Lk tiling (online softmax)
        # for long sequences / v7x 64 MiB VMEM; here (L, L) per head fits VMEM.
        outs = []
        for hi in range(heads_per_block):
            q = get_q(hi)            # (Lq, hd) bf16, 1/sqrt(hd) pre-folded in W_q
            k = get_k(hi)            # (Lk, hd) bf16
            v = get_v(hi)            # (Lk, hd) bf16
            # QK^T without transposing K: contract over hd on both operands.
            s = jax.lax.dot_general(
                q, k, dimension_numbers=(((1,), (1,)), ((), ())),
                preferred_element_type=jnp.float32)             # (Lq, Lk) f32
            m = jnp.max(s, axis=-1, keepdims=True)
            p = jnp.exp(s - m)
            denom = jnp.sum(p, axis=-1, keepdims=True)
            o = jnp.dot(p.astype(v.dtype), v,
                        preferred_element_type=jnp.float32)     # (Lq, hd) f32
            # Normalize the small (Lq, hd) output (exact reciprocal).
            o = o * pl.reciprocal(denom)
            outs.append(o)
        # Single lane-dense store for the whole head block.
        o_ref[0, :, :] = jnp.concatenate(outs, axis=-1).astype(o_ref.dtype)
    return kernel


def pallas_attention(qkv, nheads, head_dim):
    """qkv: (B, L, 3*D) fused projection output (bf16) -> (B, L, D) bf16."""
    B, L, threeD = qkv.shape
    D = threeD // 3
    hb = _heads_per_block(nheads, head_dim)
    nb = nheads // hb
    blk = hb * head_dim
    out_spec = pl.BlockSpec((1, L, blk), lambda b, h: (b, 0, h))

    if blk % 128 == 0:
        # Head (and q/k/v section) selection straight from the fused (B, L, 3D)
        # tensor via index_map offsets -> zero extra copies, 128-lane aligned.
        in_specs = [
            pl.BlockSpec((1, L, blk), lambda b, h: (b, 0, h)),
            pl.BlockSpec((1, L, blk), lambda b, h: (b, 0, h + nb)),
            pl.BlockSpec((1, L, blk), lambda b, h: (b, 0, h + 2 * nb)),
        ]
        args = (qkv, qkv, qkv)
        kernel = _make_attn_kernel(hb, head_dim, False, D)
    else:
        # Small-model fallback: load the whole fused (1, L, 3D) block and slice
        # q/k/v in-kernel (no HBM-level XLA slices of qkv).
        in_specs = [pl.BlockSpec((1, L, threeD), lambda b, h: (b, 0, 0))]
        args = (qkv,)
        kernel = _make_attn_kernel(hb, head_dim, True, D)

    return pl.pallas_call(
        kernel,
        out_shape=jax.ShapeDtypeStruct((B, L, D), qkv.dtype),
        grid_spec=pltpu.PrefetchScalarGridSpec(
            num_scalar_prefetch=0,
            grid=(B, nb),
            in_specs=in_specs,
            out_specs=out_spec,
        ),
        compiler_params=pltpu.CompilerParams(
            dimension_semantics=("parallel", "parallel")),
    )(*args)


# ----------------------------------------------------------------------------
# Encoder wrapper (parameters + forward glue; only free reshapes outside kernels).
# ----------------------------------------------------------------------------
class EncoderPallas:
    def __init__(self, num_layers, d_model, nheads, dim_feedforward=2048,
                 dropout=0.1, eps=1e-6, key=None):
        assert d_model % nheads == 0
        self.num_layers = num_layers
        self.d_model = d_model
        self.nheads = nheads
        self.head_dim = d_model // nheads
        self.dim_feedforward = dim_feedforward
        self.dropout = dropout  # identity at inference
        self.eps = eps
        if key is None:
            key = jax.random.PRNGKey(0)

        scale = 1.0 / math.sqrt(self.head_dim)
        b_in = 1.0 / math.sqrt(d_model)
        b_ff = 1.0 / math.sqrt(dim_feedforward)
        bf16 = jnp.bfloat16
        self.layers = []
        for _ in range(num_layers):
            key, *ks = jax.random.split(key, 9)
            in_proj_weight = jax.random.uniform(
                ks[0], (3 * d_model, d_model), jnp.float32, -b_in, b_in)
            in_proj_bias = jax.random.uniform(
                ks[1], (3 * d_model,), jnp.float32, -b_in, b_in)
            out_proj_weight = jax.random.uniform(
                ks[2], (d_model, d_model), jnp.float32, -b_in, b_in)
            out_proj_bias = jax.random.uniform(
                ks[3], (d_model,), jnp.float32, -b_in, b_in)
            ff_w1 = jax.random.uniform(
                ks[4], (dim_feedforward, d_model), jnp.float32, -b_in, b_in)
            ff_b1 = jax.random.uniform(
                ks[5], (dim_feedforward,), jnp.float32, -b_in, b_in)
            ff_w2 = jax.random.uniform(
                ks[6], (d_model, dim_feedforward), jnp.float32, -b_ff, b_ff)
            ff_b2 = jax.random.uniform(
                ks[7], (d_model,), jnp.float32, -b_ff, b_ff)

            # Pre-transpose once to (Din, Dout); bake 1/sqrt(hd) into Q columns.
            w_qkv_f32 = in_proj_weight.T                       # (D, 3D)
            w_qkv_scaled = w_qkv_f32.at[:, :d_model].multiply(scale)
            b_qkv_scaled = in_proj_bias.at[:d_model].multiply(scale)

            self.layers.append(dict(
                # f32 reference copies (PyTorch semantics, unscaled)
                w_qkv_f32=w_qkv_f32, b_qkv_f32=in_proj_bias,
                w_out_f32=out_proj_weight.T, b_out_f32=out_proj_bias,
                w_ff1_f32=ff_w1.T, b_ff1_f32=ff_b1,
                w_ff2_f32=ff_w2.T, b_ff2_f32=ff_b2,
                # bf16 kernel weights (pre-transposed, Q-scaled)
                w_qkv=w_qkv_scaled.astype(bf16), b_qkv=b_qkv_scaled,
                w_out=out_proj_weight.T.astype(bf16), b_out=out_proj_bias,
                w_ff1=ff_w1.T.astype(bf16), b_ff1=ff_b1,
                w_ff2=ff_w2.T.astype(bf16), b_ff2=ff_b2,
                ln1_gamma=jnp.ones((d_model,), jnp.float32),
                ln1_beta=jnp.zeros((d_model,), jnp.float32),
                ln2_gamma=jnp.ones((d_model,), jnp.float32),
                ln2_beta=jnp.zeros((d_model,), jnp.float32),
            ))

    def __call__(self, x, src_mask=None, src_key_padding_mask=None):
        # TODO(synk): attn_mask / key_padding_mask are not supported by this kernel.
        assert src_mask is None and src_key_padding_mask is None
        B, L, D = x.shape
        H, hd = self.nheads, self.head_dim
        h2 = x.reshape(B * L, D).astype(jnp.bfloat16)
        for p in self.layers:
            # --- self-attention sublayer (fused QKV projection) ---
            qkv = pallas_linear(h2, p["w_qkv"], p["b_qkv"])                   # (B*L, 3D)
            attn = pallas_attention(qkv.reshape(B, L, 3 * D), H, hd)          # (B, L, D)
            # out_proj with fused residual-add + LayerNorm epilogue.
            h2 = pallas_linear(attn.reshape(B * L, D), p["w_out"], p["b_out"],
                               mode="add_ln", residual=h2,
                               gamma=p["ln1_gamma"], beta=p["ln1_beta"],
                               eps=self.eps)
            # --- feed-forward sublayer (ReLU fused into linear1, add+LN into linear2) ---
            ff = pallas_linear(h2, p["ff_w1"] if "ff_w1" in p else p["w_ff1"],
                               p["b_ff1"], mode="relu")                       # (B*L, dff)
            h2 = pallas_linear(ff, p["w_ff2"], p["b_ff2"],
                               mode="add_ln", residual=h2,
                               gamma=p["ln2_gamma"], beta=p["ln2_beta"],
                               eps=self.eps)
            # TODO(synk): dropout (p=0.1) is identity in eval mode; training-mode dropout not implemented.
        return h2.reshape(B, L, D).astype(x.dtype)


# ----------------------------------------------------------------------------
# Pure-JAX f32 reference for correctness check.
# ----------------------------------------------------------------------------
def _layer_norm_ref(x, g, b, eps):
    mean = jnp.mean(x, axis=-1, keepdims=True)
    var = jnp.mean((x - mean) ** 2, axis=-1, keepdims=True)
    return (x - mean) * jax.lax.rsqrt(var + eps) * g + b


def reference_encoder(enc, x):
    D, H, hd, eps = enc.d_model, enc.nheads, enc.head_dim, enc.eps
    B, L, _ = x.shape
    for p in enc.layers:
        w, b = p["w_qkv_f32"], p["b_qkv_f32"]
        q = (x @ w[:, :D] + b[:D]).reshape(B, L, H, hd).transpose(0, 2, 1, 3)
        k = (x @ w[:, D:2 * D] + b[D:2 * D]).reshape(B, L, H, hd).transpose(0, 2, 1, 3)
        v = (x @ w[:, 2 * D:] + b[2 * D:]).reshape(B, L, H, hd).transpose(0, 2, 1, 3)
        s = jnp.einsum("bhqd,bhkd->bhqk", q, k) / math.sqrt(hd)
        a = jax.nn.softmax(s, axis=-1)
        o = jnp.einsum("bhqk,bhkd->bhqd", a, v).transpose(0, 2, 1, 3).reshape(B, L, D)
        attn = o @ p["w_out_f32"] + p["b_out_f32"]
        x = _layer_norm_ref(x + attn, p["ln1_gamma"], p["ln1_beta"], eps)
        h = jnp.maximum(x @ p["w_ff1_f32"] + p["b_ff1_f32"], 0.0)
        ff = h @ p["w_ff2_f32"] + p["b_ff2_f32"]
        x = _layer_norm_ref(x + ff, p["ln2_gamma"], p["ln2_beta"], eps)
    return x


if __name__ == "__main__":
    num_layers, d_model, nheads, dff = 2, 32, 4, 64
    B, L = 2, 8
    key = jax.random.PRNGKey(0)
    kx, kp = jax.random.split(key)
    x = jax.random.normal(kx, (B, L, d_model), jnp.float32)

    enc = EncoderPallas(num_layers, d_model, nheads, dff, dropout=0.1, key=kp)
    out = jax.block_until_ready(enc(x))

    ref = reference_encoder(enc, x)
    assert out.shape == (B, L, d_model)
    max_err = float(jnp.max(jnp.abs(out - ref)))
    # Tolerance accommodates bf16 matmul operands (f32 accumulation) vs f32 reference.
    assert jnp.allclose(out, ref, atol=5e-2, rtol=5e-2), f"mismatch vs reference: {max_err}"

    print("KERNEL_OK")
</pallas_src>

<mosaic_0001>
module attributes {stable_mosaic.version = 11 : i64} {
  func.func @kernel(%arg0: i32, %arg1: i32, %arg2: i32, %arg3: memref<16x32xbf16, #tpu.memory_space<vmem>>, %arg4: memref<32x96xbf16, #tpu.memory_space<vmem>>, %arg5: memref<1x96xf32, #tpu.memory_space<vmem>>, %arg6: memref<16x96xbf16, #tpu.memory_space<vmem>>, %arg7: memref<16x96xf32, #tpu.memory_space<vmem>>) attributes {dimension_semantics = [#tpu.dimension_semantics<parallel>, #tpu.dimension_semantics<parallel>, #tpu.dimension_semantics<arbitrary>], iteration_bounds = array<i64: 1, 1, 1>, scalar_prefetch = 0 : i64, scratch_operands = 1 : i64, tpu.core_type = #tpu.core_type<tc>, window_params = [{transform_indices = @transform_0, window_bounds = array<i64: 16, 32>}, {transform_indices = @transform_1, window_bounds = array<i64: 32, 96>}, {transform_indices = @transform_2, window_bounds = array<i64: 1, 96>}, {transform_indices = @transform_3, window_bounds = array<i64: 16, 96>}]} {
    %c0_i32 = arith.constant 0 : i32
    %0 = arith.cmpi eq, %arg2, %c0_i32 : i32
    %1 = arith.extui %0 : i1 to i32
    %c0_i32_0 = arith.constant 0 : i32
    %2 = arith.cmpi ne, %1, %c0_i32_0 : i32
    scf.if %2 {
      %cst_10 = arith.constant 0.000000e+00 : f32
      %12 = vector.broadcast %cst_10 : f32 to vector<16x96xf32>
      %c0_11 = arith.constant 0 : index
      %c0_12 = arith.constant 0 : index
      %13 = vector.load %arg7[%c0_11, %c0_12] : memref<16x96xf32, #tpu.memory_space<vmem>>, vector<16x96xf32>
      tpu.vector_store %arg7[%c0_11, %c0_12], %12 {strides = array<i32>} : memref<16x96xf32, #tpu.memory_space<vmem>>, vector<16x96xf32>,
    } else {
    }
    %c0 = arith.constant 0 : index
    %c0_1 = arith.constant 0 : index
    %3 = vector.load %arg7[%c0, %c0_1] : memref<16x96xf32, #tpu.memory_space<vmem>>, vector<16x96xf32>
    %c0_2 = arith.constant 0 : index
    %c0_3 = arith.constant 0 : index
    %4 = vector.load %arg3[%c0_2, %c0_3] : memref<16x32xbf16, #tpu.memory_space<vmem>>, vector<16x32xbf16>
    %c0_4 = arith.constant 0 : index
    %c0_5 = arith.constant 0 : index
    %5 = vector.load %arg4[%c0_4, %c0_5] : memref<32x96xbf16, #tpu.memory_space<vmem>>, vector<32x96xbf16>
    %cst = arith.constant dense<0.000000e+00> : vector<16x96xf32>
    %6 = tpu.matmul %4, %5, %cst {dimension_numbers = #tpu.dot_dimension_numbers<[1], [0], [0], [1], [0, 0, 1, 1], [], []>} : vector<16x32xbf16>, vector<32x96xbf16>, vector<16x96xf32> -> vector<16x96xf32>
    %7 = arith.addf %3, %6 : vector<16x96xf32>
    %c0_6 = arith.constant 0 : index
    %c0_7 = arith.constant 0 : index
    %8 = vector.load %arg7[%c0_6, %c0_7] : memref<16x96xf32, #tpu.memory_space<vmem>>, vector<16x96xf32>
    tpu.vector_store %arg7[%c0_6, %c0_7], %7 {strides = array<i32>} : memref<16x96xf32, #tpu.memory_space<vmem>>, vector<16x96xf32>,
    %c0_i32_8 = arith.constant 0 : i32
    %9 = arith.cmpi eq, %arg2, %c0_i32_8 : i32
    %10 = arith.extui %9 : i1 to i32
    %c0_i32_9 = arith.constant 0 : i32
    %11 = arith.cmpi ne, %10, %c0_i32_9 : i32
    scf.if %11 {
      %c0_10 = arith.constant 0 : index
      %c0_11 = arith.constant 0 : index
      %12 = vector.load %arg7[%c0_10, %c0_11] : memref<16x96xf32, #tpu.memory_space<vmem>>, vector<16x96xf32>
      %c0_12 = arith.constant 0 : index
      %c0_13 = arith.constant 0 : index
      %13 = vector.load %arg5[%c0_12, %c0_13] : memref<1x96xf32, #tpu.memory_space<vmem>>, vector<1x96xf32>
      %14 = vector.broadcast %13 : vector<1x96xf32> to vector<16x96xf32>
      %15 = arith.addf %12, %14 : vector<16x96xf32>
      %16 = arith.truncf %15 : vector<16x96xf32> to vector<16x96xbf16>
      %c0_14 = arith.constant 0 : index
      %c0_15 = arith.constant 0 : index
      %17 = vector.load %arg6[%c0_14, %c0_15] : memref<16x96xbf16, #tpu.memory_space<vmem>>, vector<16x96xbf16>
      tpu.vector_store %arg6[%c0_14, %c0_15], %16 {strides = array<i32>} : memref<16x96xbf16, #tpu.memory_space<vmem>>, vector<16x96xbf16>,
    } else {
    }
    return
  }
  func.func @transform_0(%arg0: i32, %arg1: i32, %arg2: i32) -> (i32, i32) {
    %c0_i32 = arith.constant 0 : i32
    return %arg0, %arg2 : i32, i32
  }
  func.func @transform_1(%arg0: i32, %arg1: i32, %arg2: i32) -> (i32, i32) {
    %c0_i32 = arith.constant 0 : i32
    return %arg2, %arg1 : i32, i32
  }
  func.func @transform_2(%arg0: i32, %arg1: i32, %arg2: i32) -> (i32, i32) {
    %c0_i32 = arith.constant 0 : i32
    %c0_i32_0 = arith.constant 0 : i32
    return %c0_i32, %arg1 : i32, i32
  }
  func.func @transform_3(%arg0: i32, %arg1: i32, %arg2: i32) -> (i32, i32) {
    %c0_i32 = arith.constant 0 : i32
    return %arg0, %arg1 : i32, i32
  }
}

</mosaic_0001>

<bundles_post_ra>
// kernel: tpu_custom_call.1
= control target key start
LH: loop header
LB: loop body
LE: loop exit
PB: predicated region body
PF: predicated region fallthrough
CT: control target
= control target key end

     0   :  { %8 = vsyncpa [#allocation4], 0  ;;  %s291_s0 = inlined_call_operand.hbm [shape: bf16[16,32], index: 0, kind: input, shape index: {}]   ;;  %s292_s1 = inlined_call_operand.hbm [shape: bf16[32,96], index: 1, kind: input, shape index: {}]   ;;  %s293_s2 = inlined_call_operand.vmem [shape: f32[1,96], index: 2, kind: input, shape index: {}]   ;;  %s294_s3 = inlined_call_operand.hbm [shape: bf16[16,96], index: 3, kind: output, shape index: {}]  }
   0x1   :  { %9 = vsyncpa [#allocation7], 0 }
   0x2   :  { %10 = vsyncpa [#allocation5], 0  ;;  %s15_s14 = sshll.u32 %s291_s0, 4  ;;  %s240_s15 = smov [#allocation3]   ;;  %s16_s14 = int_to_ptr.hbm [resolvable:$true] %s15_s14 }
   0x3   :  { %s17_s16 = sshll.u32 %s240_s15, 4  ;;  %s28_s19 = sshll.u32 %s292_s1, 4  ;;  %s18_s16 = int_to_ptr.vmem [resolvable:$true] %s17_s16  ;;  %s29_s19 = int_to_ptr.hbm [resolvable:$true] %s28_s19 }
   0x4   :  { %s241_s20 = smov 64   ;;  %s242_s21 = smov 4  }
   0x5   :  { %23 = dma.hbm_to_vmem [thread:$0]  %s16_s14, 128, %s18_s16, [#allocation4], %s241_s20, %s241_s20, %s242_s21  }
   0x6   :  { %s243_s22 = smov [#allocation6]  }
   0x7   :  { %s30_s23 = sshll.u32 %s243_s22, 4  ;;  %s31_s23 = int_to_ptr.vmem [resolvable:$true] %s30_s23 }
   0x8   :  { %36 = dma.hbm_to_vmem [thread:$0]  %s29_s19, 256, %s31_s23, [#allocation7], %s241_s20, %s241_s20, %s242_s21  }
   0x9   :  { %234 = dma.done.wait [#allocation4], 128  }
   0xa   :  { %235 = vsyncadd [#allocation4], 4294967168 }
   0xb   :  { %236 = dma.done.wait [#allocation7], 256  }
   0xc   :  { %237 = vsyncadd [#allocation7], 4294967040  ;;  %vm52_vm0 = vcmask 785408   ;;  %v244_v0 = vmov 0.0   ;;  %v154_v1 = vld [vmem:[#allocation6 + $0x8] sm:$0xff]  ;;  %v153_v2 = vld [vmem:[#allocation6] sm:$0xff] }
   0xd   :  { %53 = vst.msk [vmem:[#allocation2] sm:$0xff] %vm52_vm0, %v244_v0  ;;  %90 = vmatpush.bf16.msra.mxu0 %v154_v1  ;;  %v152_v3 = vld [vmem:[#allocation3] sm:$0xff]  ;;  %vm80_vm1 = vcmask 261120   ;;  %v161_v8 = vld [vmem:[%s293_s2] ss:$0 sm:$0xff]  ;;  %vm116_vm2 = vcmask 781312  }
   0xe   :  { %54 = vst.msk [vmem:[#allocation2 + $0x8] sm:$0xff] %vm52_vm0, %v244_v0  ;;  %s245_s24 = smov [#allocation8]   ;;  %s125_s28 = sshll.u32 %s294_s3, 4  ;;  %s126_s28 = int_to_ptr.hbm [resolvable:$true] %s125_s28 }
   0xf   :  { %s123_s25 = sshll.u32 %s245_s24, 4  ;;  %s124_s25 = int_to_ptr.vmem [resolvable:$true] %s123_s25 }
  0x11   :  { %91 = vmatpush.bf16.msra.mxu0 %v153_v2 }
  0x14   :  { %151 = vmatmul.msk.bf16.vlgmr.msra.gmra.mxu0 %vm80_vm1, %v152_v3  ;;  %v55_v4 = vld [vmem:[#allocation2] sm:$0xff] }
  0x15   :  { %v56_v7 = vld [vmem:[#allocation2 + $0x8] sm:$0xff] }
  0x91   :  { %v93_v5 = vpop.f32.mrf.mxu0 }
  0x92   :  { %v98_v6 = vadd.f32 %v93_v5, %v55_v4 }
  0x94   :  { %101 = vst.msk [vmem:[#allocation2] sm:$0xff] %vm52_vm0, %v98_v6 }
  0x99   :  { %v95_v9 = vpop.f32.mrf.mxu0 }
  0x9a   :  { %v99_v10 = vadd.f32 %v95_v9, %v56_v7 }
  0x9b   :  { %v106_v11 = vld [vmem:[#allocation2] sm:$0xff] }
  0x9c   :  { %102 = vst.msk [vmem:[#allocation2 + $0x8] sm:$0xff] %vm52_vm0, %v99_v10  ;;  %v112_v12 = vadd.f32 %v161_v8, %v106_v11 }
  0x9e   :  { %v114_v13 = vpack.c.bf16 %v112_v12, %v112_v12 }
  0xa0   :  { %117 = vst.msk [vmem:[#allocation8] sm:$0xf] %vm116_vm2, %v114_v13 }
  0xa3   :  { %v107_v14 = vld [vmem:[#allocation2 + $0x8] sm:$0xff] }
  0xa4   :  { %v113_v15 = vadd.f32 %v161_v8, %v107_v14 }
  0xa6   :  { %v115_v16 = vpack.c.bf16 %v113_v15, %v113_v15 }
  0xa8   :  { %118 = vst.msk [vmem:[#allocation8 + $0x4] sm:$0xf] %vm116_vm2, %v115_v16 }
  0xa9   :  { %131 = dma.vmem_to_hbm [thread:$0]  %s124_s25, 128, %s126_s28, [#allocation5], %s241_s20, %s241_s20, %s242_s21  }
  0xaa   :  { %238 = dma.done.wait [#allocation5], 128  }
  0xab   :  { %239 = vsyncadd [#allocation5], 4294967168 }
  0xac   :  { %136 = vsyncpa [#allocation4], 1 }
  0xad   :  { %137 = vsyncpa [#allocation7], 1 }
  0xae   :  { %138 = vsyncpa [#allocation5], 1 }

</bundles_post_ra>
